<compile_context>
chip_gen: v7x
topology: tpu7x:2x2x1
jax: 0.10.0
libtpu: 0.0.40
codegen_flags: <defaults>
</compile_context>

<pallas_src>
import functools

import jax
import jax.numpy as jnp
from jax import lax
from jax.experimental import pallas as pl
from jax.experimental.pallas import tpu as pltpu


def _round_up(x, m):
    return (x + m - 1) // m * m


def _fused_rd_bias_kernel(n_true, tile_j, bf16_exp,
                          di_ref, dj_ref, mu_ref, nhiv_ref, wp_ref, bp_ref,
                          bias_ref, ksum_ref):
    j_blk = pl.program_id(1)

    # Coordinate columns for the i- and j-tiles, as (T, 1) sublane columns.
    xi = di_ref[:, 0:1]                       # (TI, 1)
    yi = di_ref[:, 1:2]
    xj = dj_ref[:, 0:1]                       # (TJ, 1)
    yj = dj_ref[:, 1:2]

    # Pairwise distance built directly in output orientation (TI, TJ, 1):
    # TJ on sublanes, the size-1 trailing dim on lanes, so broadcasting
    # against the (1, 1, K) constants below is a pure lane-broadcast (no XLU
    # relayout of an (n, n) intermediate).
    dx = xi[:, None, :] - xj[None, :, :]      # (TI, TJ, 1)
    dy = yi[:, None, :] - yj[None, :, :]
    r = jnp.sqrt(dx * dx + dy * dy)           # (TI, TJ, 1)

    mu = mu_ref[...][None, :, :]              # (1, 1, K)
    nhiv = nhiv_ref[...][None, :, :]          # (1, 1, K) == -0.5/(sigma^2+eps)

    diff = r - mu                             # (TI, TJ, K)
    arg = diff * diff * nhiv
    if bf16_exp:                              # optional v7x EUP relief
        p = jnp.exp(arg.astype(jnp.bfloat16))
    else:
        p = jnp.exp(arg)                      # (TI, TJ, K)

    # Zero columns beyond the true node count: keeps remainder-tile garbage
    # out of the row-sum (bias rows/cols past n are masked on writeback).
    col = j_blk * tile_j + lax.broadcasted_iota(jnp.int32, (1, tile_j, 1), 1)
    p = jnp.where(col < n_true, p, jnp.zeros([], p.dtype))

    # edge_feature.sum(dim=-2), accumulated in the resident output block
    # across the "arbitrary" j grid axis.
    @pl.when(j_blk == 0)
    def _():
        ksum_ref[...] = jnp.zeros_like(ksum_ref)
    ksum_ref[...] += p.astype(jnp.float32).sum(axis=1)            # (TI, K)

    # Fused gbf_proj = ReLU(Linear(K -> H)) on the MXU; only H lanes written.
    ti, tj, k = p.shape
    p2 = p.reshape(ti * tj, k)                                    # lane dim K kept
    proj = jnp.dot(p2, wp_ref[...].astype(p2.dtype),
                   preferred_element_type=jnp.float32)            # (TI*TJ, H)
    proj = jnp.maximum(proj + bp_ref[...], 0.0)
    bias_ref[...] = proj.reshape(ti, tj, -1).astype(bias_ref.dtype)


def graph_rd_bias(dist, mu, sigma, proj_w, proj_b, edge_w=None, edge_b=None, *,
                  tile_i=128, tile_j=128, bf16_exp=False,
                  vmem_limit_bytes=48 * 1024 * 1024):
    """Fused GraphRDBias forward.

    dist: (n, 2); mu, sigma: (1, K); proj_w: (K, H); proj_b: (H,);
    edge_w: (K, E) or None; edge_b: (E,) or None.
    Returns (graph_attn_bias (H, n, n), merge_edge_features (n, E or K)).
    """
    dist = dist.astype(jnp.float32)
    mu = mu.astype(jnp.float32)
    sigma = sigma.astype(jnp.float32)
    proj_w = proj_w.astype(jnp.float32)

    n = dist.shape[0]
    k = mu.shape[-1]
    h = proj_w.shape[-1]

    mu2 = mu.reshape(1, k)
    # Hoisted per-kernel constant (exact divide done once, outside the kernel).
    neg_half_inv_var = (-0.5 / (sigma * sigma + 1e-6)).reshape(1, k)
    bp = proj_b.reshape(1, h).astype(jnp.float32)

    # Pad node count to a sublane multiple so in-kernel reshapes are layout
    # preserving for any n; padded rows/cols are masked / sliced away.
    n_pad = _round_up(n, 8)
    if n_pad != n:
        dist = jnp.pad(dist, ((0, n_pad - n), (0, 0)))

    ti = n_pad if n_pad <= tile_i else tile_i
    tj = n_pad if n_pad <= tile_j else tile_j
    assert ti % 8 == 0 and tj % 8 == 0, "tile_i / tile_j must be multiples of 8"
    grid = (pl.cdiv(n_pad, ti), pl.cdiv(n_pad, tj))

    kernel = functools.partial(_fused_rd_bias_kernel, n, tj, bf16_exp)

    bias_nnh, ksum = pl.pallas_call(
        kernel,
        out_shape=(
            jax.ShapeDtypeStruct((n_pad, n_pad, h), jnp.float32),
            jax.ShapeDtypeStruct((n_pad, k), jnp.float32),
        ),
        grid=grid,
        in_specs=[
            pl.BlockSpec((ti, 2), lambda i, j: (i, 0)),   # dist, i-tile
            pl.BlockSpec((tj, 2), lambda i, j: (j, 0)),   # dist, j-tile
            pl.BlockSpec((1, k), lambda i, j: (0, 0)),    # mu
            pl.BlockSpec((1, k), lambda i, j: (0, 0)),    # -0.5/(sigma^2+eps)
            pl.BlockSpec((k, h), lambda i, j: (0, 0)),    # projection weight
            pl.BlockSpec((1, h), lambda i, j: (0, 0)),    # projection bias
        ],
        out_specs=(
            pl.BlockSpec((ti, tj, h), lambda i, j: (i, j, 0)),
            pl.BlockSpec((ti, k), lambda i, j: (i, 0)),   # resident across j
        ),
        compiler_params=pltpu.CompilerParams(
            dimension_semantics=("parallel", "arbitrary"),
            vmem_limit_bytes=vmem_limit_bytes),
    )(dist, dist, mu2, neg_half_inv_var, proj_w, bp)

    bias_nnh = bias_nnh[:n, :n, :]
    ksum = ksum[:n, :]
    graph_attn_bias = jnp.transpose(bias_nnh, (2, 0, 1))          # (H, n, n)
    if edge_w is not None:
        merge = ksum @ edge_w.astype(jnp.float32) + edge_b.astype(jnp.float32)
    else:
        merge = ksum
    return graph_attn_bias, merge


def graph_rd_bias_ref(dist, mu, sigma, proj_w, proj_b, edge_w=None, edge_b=None):
    """Pure-JAX reference mirroring the PyTorch GraphRDBias forward."""
    dist = dist.astype(jnp.float32)
    d = dist[:, None, :] - dist[None, :, :]                       # (n, n, 2)
    r = jnp.linalg.norm(d, axis=-1, keepdims=True)                # (n, n, 1)
    diff = r - mu                                                 # (n, n, K)
    edge = jnp.exp(-0.5 * diff ** 2 / (sigma ** 2 + 1e-6))        # (n, n, K)
    gbf = jax.nn.relu(
        jnp.einsum("ijk,kh->ijh", edge, proj_w,
                   precision=jax.lax.Precision.HIGHEST) + proj_b)  # (n, n, H)
    graph_attn_bias = jnp.transpose(gbf, (2, 0, 1))               # (H, n, n)
    ksum = edge.sum(axis=-2)                                      # (n, K)
    if edge_w is not None:
        merge = ksum @ edge_w + edge_b
    else:
        merge = ksum
    return graph_attn_bias, merge


def _max_rel_err(a, b):
    denom = jnp.maximum(jnp.max(jnp.abs(b)), 1.0)
    return float(jnp.max(jnp.abs(a - b)) / denom)


if __name__ == "__main__":
    num_kernel = 128      # K: lane-dense
    num_heads = 8         # H
    embed_dim = 32        # E != K -> edge_proj path active

    key = jax.random.PRNGKey(0)
    ks = jax.random.split(key, 10)

    # Deterministic "parameters" (torch randn-style init, modest scale).
    mu = jax.random.normal(ks[0], (1, num_kernel), dtype=jnp.float32)
    sigma = jax.random.normal(ks[1], (1, num_kernel), dtype=jnp.float32)
    proj_w = 0.1 * jax.random.normal(ks[2], (num_kernel, num_heads), jnp.float32)
    proj_b = 0.1 * jax.random.normal(ks[3], (num_heads,), jnp.float32)
    edge_w = 0.1 * jax.random.normal(ks[4], (num_kernel, embed_dim), jnp.float32)
    edge_b = 0.1 * jax.random.normal(ks[5], (embed_dim,), jnp.float32)

    def check(n, dkey, **kw):
        dist = jax.random.normal(dkey, (n, 2), dtype=jnp.float32)
        bias, merge = graph_rd_bias(dist, mu, sigma, proj_w, proj_b,
                                    edge_w, edge_b, **kw)
        bias = jax.block_until_ready(bias)
        merge = jax.block_until_ready(merge)
        assert bias.shape == (num_heads, n, n), bias.shape
        assert merge.shape == (n, embed_dim), merge.shape
        ref_bias, ref_merge = graph_rd_bias_ref(dist, mu, sigma, proj_w, proj_b,
                                                edge_w, edge_b)
        eb = _max_rel_err(bias, ref_bias)
        em = _max_rel_err(merge, ref_merge)
        # Bias goes through the in-kernel MXU matmul (default f32 precision);
        # allow a loose-but-meaningful bound.  The row-sum path is VPU-only.
        assert eb < 2e-2, (n, eb)
        assert em < 1e-3, (n, em)

    # Case 1: small graph -> single block (unit-test size).
    check(8, ks[6])
    # Case 2: n not a multiple of 8, remainder tiles, (i, j) grid,
    #         j-axis row-sum accumulation + column masking.
    check(37, ks[7], tile_i=16, tile_j=16)
    # Case 3: full-size default tiles (128 x 128) with a 2x2 grid.
    check(256, ks[8])

    print("KERNEL_OK")
</pallas_src>

<mosaic_0001>
module attributes {stable_mosaic.version = 11 : i64} {
  func.func @_fused_rd_bias_kernel(%arg0: i32, %arg1: i32, %arg2: memref<8x2xf32, #tpu.memory_space<vmem>>, %arg3: memref<8x2xf32, #tpu.memory_space<vmem>>, %arg4: memref<1x128xf32, #tpu.memory_space<vmem>>, %arg5: memref<1x128xf32, #tpu.memory_space<vmem>>, %arg6: memref<128x8xf32, #tpu.memory_space<vmem>>, %arg7: memref<1x8xf32, #tpu.memory_space<vmem>>, %arg8: memref<8x8x8xf32, #tpu.memory_space<vmem>>, %arg9: memref<8x128xf32, #tpu.memory_space<vmem>>) attributes {dimension_semantics = [#tpu.dimension_semantics<parallel>, #tpu.dimension_semantics<arbitrary>], iteration_bounds = array<i64: 1, 1>, scalar_prefetch = 0 : i64, scratch_operands = 0 : i64, tpu.core_type = #tpu.core_type<tc>, window_params = [{transform_indices = @transform_0, window_bounds = array<i64: 8, 2>}, {transform_indices = @transform_1, window_bounds = array<i64: 8, 2>}, {pipeline_mode = #tpu.pipeline_mode<synchronous>, transform_indices = @transform_2, window_bounds = array<i64: 1, 128>}, {pipeline_mode = #tpu.pipeline_mode<synchronous>, transform_indices = @transform_3, window_bounds = array<i64: 1, 128>}, {pipeline_mode = #tpu.pipeline_mode<synchronous>, transform_indices = @transform_4, window_bounds = array<i64: 128, 8>}, {pipeline_mode = #tpu.pipeline_mode<synchronous>, transform_indices = @transform_5, window_bounds = array<i64: 1, 8>}, {transform_indices = @transform_6, window_bounds = array<i64: 8, 8, 8>}, {transform_indices = @transform_7, window_bounds = array<i64: 8, 128>}]} {
    %c0 = arith.constant 0 : index
    %c0_0 = arith.constant 0 : index
    %0 = vector.load %arg2[%c0, %c0_0] : memref<8x2xf32, #tpu.memory_space<vmem>>, vector<8x1xf32>
    %c0_1 = arith.constant 0 : index
    %c1 = arith.constant 1 : index
    %1 = vector.load %arg2[%c0_1, %c1] : memref<8x2xf32, #tpu.memory_space<vmem>>, vector<8x1xf32>
    %c0_2 = arith.constant 0 : index
    %c0_3 = arith.constant 0 : index
    %2 = vector.load %arg3[%c0_2, %c0_3] : memref<8x2xf32, #tpu.memory_space<vmem>>, vector<8x1xf32>
    %c0_4 = arith.constant 0 : index
    %c1_5 = arith.constant 1 : index
    %3 = vector.load %arg3[%c0_4, %c1_5] : memref<8x2xf32, #tpu.memory_space<vmem>>, vector<8x1xf32>
    %4 = vector.shape_cast %0 : vector<8x1xf32> to vector<8x1x1xf32>
    %5 = vector.shape_cast %2 : vector<8x1xf32> to vector<1x8x1xf32>
    %6 = vector.broadcast %4 : vector<8x1x1xf32> to vector<8x8x1xf32>
    %7 = vector.broadcast %5 : vector<1x8x1xf32> to vector<8x8x1xf32>
    %8 = arith.subf %6, %7 : vector<8x8x1xf32>
    %9 = vector.shape_cast %1 : vector<8x1xf32> to vector<8x1x1xf32>
    %10 = vector.shape_cast %3 : vector<8x1xf32> to vector<1x8x1xf32>
    %11 = vector.broadcast %9 : vector<8x1x1xf32> to vector<8x8x1xf32>
    %12 = vector.broadcast %10 : vector<1x8x1xf32> to vector<8x8x1xf32>
    %13 = arith.subf %11, %12 : vector<8x8x1xf32>
    %14 = arith.mulf %8, %8 : vector<8x8x1xf32>
    %15 = arith.mulf %13, %13 : vector<8x8x1xf32>
    %16 = arith.addf %14, %15 : vector<8x8x1xf32>
    %17 = math.sqrt %16 : vector<8x8x1xf32>
    %c0_6 = arith.constant 0 : index
    %c0_7 = arith.constant 0 : index
    %18 = vector.load %arg4[%c0_6, %c0_7] : memref<1x128xf32, #tpu.memory_space<vmem>>, vector<1x128xf32>
    %19 = vector.shape_cast %18 : vector<1x128xf32> to vector<1x1x128xf32>
    %c0_8 = arith.constant 0 : index
    %c0_9 = arith.constant 0 : index
    %20 = vector.load %arg5[%c0_8, %c0_9] : memref<1x128xf32, #tpu.memory_space<vmem>>, vector<1x128xf32>
    %21 = vector.shape_cast %20 : vector<1x128xf32> to vector<1x1x128xf32>
    %22 = vector.broadcast %17 : vector<8x8x1xf32> to vector<8x8x128xf32>
    %23 = vector.broadcast %19 : vector<1x1x128xf32> to vector<8x8x128xf32>
    %24 = arith.subf %22, %23 : vector<8x8x128xf32>
    %25 = arith.mulf %24, %24 : vector<8x8x128xf32>
    %26 = vector.broadcast %21 : vector<1x1x128xf32> to vector<8x8x128xf32>
    %27 = arith.mulf %25, %26 : vector<8x8x128xf32>
    %28 = math.exp %27 : vector<8x8x128xf32>
    %c8_i32 = arith.constant 8 : i32
    %29 = arith.muli %arg1, %c8_i32 : i32
    %30 = tpu.iota {dimensions = array<i32: 1>} : vector<1x8x1xi32>
    %31 = vector.broadcast %29 : i32 to vector<1x8x1xi32>
    %32 = arith.addi %31, %30 : vector<1x8x1xi32>
    %c8_i32_10 = arith.constant 8 : i32
    %33 = vector.broadcast %c8_i32_10 : i32 to vector<1x8x1xi32>
    %34 = arith.cmpi slt, %32, %33 : vector<1x8x1xi32>
    %cst = arith.constant 0.000000e+00 : f32
    %35 = vector.shape_cast %34 : vector<1x8x1xi1> to vector<1x8x1xi1>
    %36 = vector.broadcast %35 : vector<1x8x1xi1> to vector<8x8x128xi1>
    %37 = vector.broadcast %cst : f32 to vector<8x8x128xf32>
    %38 = arith.select %36, %28, %37 : vector<8x8x128xi1>, vector<8x8x128xf32>
    %c0_i32 = arith.constant 0 : i32
    %39 = arith.cmpi eq, %arg1, %c0_i32 : i32
    %40 = arith.extui %39 : i1 to i32
    %c0_i32_11 = arith.constant 0 : i32
    %41 = arith.cmpi ne, %40, %c0_i32_11 : i32
    scf.if %41 {
      %cst_26 = arith.constant 0.000000e+00 : f32
      %56 = vector.broadcast %cst_26 : f32 to vector<8x128xf32>
      %c0_27 = arith.constant 0 : index
      %c0_28 = arith.constant 0 : index
      %57 = vector.load %arg9[%c0_27, %c0_28] : memref<8x128xf32, #tpu.memory_space<vmem>>, vector<8x128xf32>
      tpu.vector_store %arg9[%c0_27, %c0_28], %56 {strides = array<i32>} : memref<8x128xf32, #tpu.memory_space<vmem>>, vector<8x128xf32>,
    } else {
    }
    %c0_12 = arith.constant 0 : index
    %c0_13 = arith.constant 0 : index
    %42 = vector.load %arg9[%c0_12, %c0_13] : memref<8x128xf32, #tpu.memory_space<vmem>>, vector<8x128xf32>
    %cst_14 = arith.constant dense<0.000000e+00> : vector<8x128xf32>
    %43 = vector.multi_reduction <add>, %38, %cst_14 [1] : vector<8x8x128xf32> to vector<8x128xf32>
    %44 = arith.addf %42, %43 : vector<8x128xf32>
    %c0_15 = arith.constant 0 : index
    %c0_16 = arith.constant 0 : index
    %45 = vector.load %arg9[%c0_15, %c0_16] : memref<8x128xf32, #tpu.memory_space<vmem>>, vector<8x128xf32>
    tpu.vector_store %arg9[%c0_15, %c0_16], %44 {strides = array<i32>} : memref<8x128xf32, #tpu.memory_space<vmem>>, vector<8x128xf32>,
    %46 = vector.shape_cast %38 : vector<8x8x128xf32> to vector<64x128xf32>
    %c0_17 = arith.constant 0 : index
    %c0_18 = arith.constant 0 : index
    %47 = vector.load %arg6[%c0_17, %c0_18] : memref<128x8xf32, #tpu.memory_space<vmem>>, vector<128x8xf32>
    %cst_19 = arith.constant dense<0.000000e+00> : vector<64x8xf32>
    %48 = tpu.matmul %46, %47, %cst_19 {dimension_numbers = #tpu.dot_dimension_numbers<[1], [0], [0], [1], [0, 0, 1, 1], [], []>} : vector<64x128xf32>, vector<128x8xf32>, vector<64x8xf32> -> vector<64x8xf32>
    %c0_20 = arith.constant 0 : index
    %c0_21 = arith.constant 0 : index
    %49 = vector.load %arg7[%c0_20, %c0_21] : memref<1x8xf32, #tpu.memory_space<vmem>>, vector<1x8xf32>
    %50 = vector.broadcast %49 : vector<1x8xf32> to vector<64x8xf32>
    %51 = arith.addf %48, %50 : vector<64x8xf32>
    %cst_22 = arith.constant 0.000000e+00 : f32
    %52 = vector.broadcast %cst_22 : f32 to vector<64x8xf32>
    %53 = arith.maximumf %51, %52 : vector<64x8xf32>
    %54 = vector.shape_cast %53 : vector<64x8xf32> to vector<8x8x8xf32>
    %c0_23 = arith.constant 0 : index
    %c0_24 = arith.constant 0 : index
    %c0_25 = arith.constant 0 : index
    %55 = vector.load %arg8[%c0_23, %c0_24, %c0_25] : memref<8x8x8xf32, #tpu.memory_space<vmem>>, vector<8x8x8xf32>
    tpu.vector_store %arg8[%c0_23, %c0_24, %c0_25], %54 {strides = array<i32>} : memref<8x8x8xf32, #tpu.memory_space<vmem>>, vector<8x8x8xf32>,
    return
  }
  func.func @transform_0(%arg0: i32, %arg1: i32) -> (i32, i32) {
    %c0_i32 = arith.constant 0 : i32
    %c0_i32_0 = arith.constant 0 : i32
    return %arg0, %c0_i32 : i32, i32
  }
  func.func @transform_1(%arg0: i32, %arg1: i32) -> (i32, i32) {
    %c0_i32 = arith.constant 0 : i32
    %c0_i32_0 = arith.constant 0 : i32
    return %arg1, %c0_i32 : i32, i32
  }
  func.func @transform_2(%arg0: i32, %arg1: i32) -> (i32, i32) {
    %c0_i32 = arith.constant 0 : i32
    %c0_i32_0 = arith.constant 0 : i32
    %c0_i32_1 = arith.constant 0 : i32
    return %c0_i32, %c0_i32_0 : i32, i32
  }
  func.func @transform_3(%arg0: i32, %arg1: i32) -> (i32, i32) {
    %c0_i32 = arith.constant 0 : i32
    %c0_i32_0 = arith.constant 0 : i32
    %c0_i32_1 = arith.constant 0 : i32
    return %c0_i32, %c0_i32_0 : i32, i32
  }
  func.func @transform_4(%arg0: i32, %arg1: i32) -> (i32, i32) {
    %c0_i32 = arith.constant 0 : i32
    %c0_i32_0 = arith.constant 0 : i32
    %c0_i32_1 = arith.constant 0 : i32
    return %c0_i32, %c0_i32_0 : i32, i32
  }
  func.func @transform_5(%arg0: i32, %arg1: i32) -> (i32, i32) {
    %c0_i32 = arith.constant 0 : i32
    %c0_i32_0 = arith.constant 0 : i32
    %c0_i32_1 = arith.constant 0 : i32
    return %c0_i32, %c0_i32_0 : i32, i32
  }
  func.func @transform_6(%arg0: i32, %arg1: i32) -> (i32, i32, i32) {
    %c0_i32 = arith.constant 0 : i32
    %c0_i32_0 = arith.constant 0 : i32
    return %arg0, %arg1, %c0_i32 : i32, i32, i32
  }
  func.func @transform_7(%arg0: i32, %arg1: i32) -> (i32, i32) {
    %c0_i32 = arith.constant 0 : i32
    %c0_i32_0 = arith.constant 0 : i32
    return %arg0, %c0_i32 : i32, i32
  }
}

</mosaic_0001>

<bundles_post_ra>
// kernel: tpu_custom_call.1
= control target key start
LH: loop header
LB: loop body
LE: loop exit
PB: predicated region body
PF: predicated region fallthrough
CT: control target
= control target key end

     0   :  { %13 = vsyncpa [#allocation3], 0  ;;  %v34_v0 = vlaneseq  ;;  %v805_v1 = vmov 1966171168   ;;  %s987_s0 = inlined_call_operand.vmem [shape: f32[8,2], index: 0, kind: input, shape index: {}]   ;;  %s988_s1 = inlined_call_operand.vmem [shape: f32[8,2], index: 1, kind: input, shape index: {}]   ;;  %s989_s2 = inlined_call_operand.vmem [shape: f32[1,128], index: 2, kind: input, shape index: {}]   ;;  %s990_s3 = inlined_call_operand.vmem [shape: f32[1,128], index: 3, kind: input, shape index: {}]   ;;  %s991_s4 = inlined_call_operand.vmem [shape: f32[128,8], index: 4, kind: input, shape index: {}]   ;;  %s992_s5 = inlined_call_operand.vmem [shape: f32[1,8], index: 5, kind: input, shape index: {}]   ;;  %s993_s6 = inlined_call_operand.hbm [shape: f32[8,8,8], index: 6, kind: output, shape index: {0}]   ;;  %s994_s7 = inlined_call_operand.hbm [shape: f32[8,128], index: 7, kind: output, shape index: {1}]  }
   0x1   :  { %v32_v2 = vunpack.c.l.s4 %v805_v1 }
   0x2   :  { %14 = vsyncpa [#allocation5], 0  ;;  %v27_v3 = vld [vmem:[%s987_s0] sm:$0xff]  ;;  %v35_v4 = vshrl.u32 %v34_v0, 7  ;;  %s806_s0 = smov 127   ;;  %v807_v40 = vmov 0  }
   0x3   :  { %v33_v5 = vunpack.c.0.s8 %v32_v2  ;;  %v30_v6 = vcombine.high %v27_v3, %v27_v3  ;;  %v28_v15 = vld [vmem:[%s988_s1] sm:$0xff]  ;;  %722 = vset.pattern.permute.xlu0 %v807_v40  ;;  %723 = vset.pattern.permute.xlu1 %v807_v40  ;;  %v421_v48 = vld [vmem:[%s991_s4 + $0x8] sm:$0xff]  ;;  %v422_v49 = vld [vmem:[%s991_s4 + $0x10] sm:$0xff] }
   0x4   :  { %v81_v9 = vsub.s32 0, %v35_v4  ;;  %v420_v47 = vld [vmem:[%s991_s4] sm:$0xff]  ;;  %v423_v51 = vld [vmem:[%s991_s4 + $0x18] sm:$0xff] }
   0x5   :  { %v36_v7 = vsub.s32 %v33_v5, %v35_v4  ;;  %v666_v50 = vpack.c.bf16 %v421_v48, %v420_v47  ;;  %v670_v52 = vpack.c.bf16 %v423_v51, %v422_v49  ;;  %v430_v49 = vld [vmem:[%s991_s4 + $0x50] sm:$0xff] }
   0x7   :  { %v37_v8 = vrot.slane %v27_v3, %v36_v7  ;;  %v44_v10 = vrot.slane %v30_v6, %v36_v7  ;;  %698 = vmatprep.subr.bf16.mxu1 %v666_v50  ;;  %667 = vmatprep.subr.bf16.mxu0 %v666_v50 }
   0x8   :  { %706 = vmatpush3.bf16.msra.mxu1 %v666_v50  ;;  %669 = vmatpush3.bf16.msra.mxu0 %v666_v50  ;;  %v431_v50 = vld [vmem:[%s991_s4 + $0x58] sm:$0xff] }
   0x9   :  { %v53_v11 = vrot.slane %v37_v8, %v36_v7  ;;  %v45_v12 = vcombine.high %v37_v8, %v37_v8  ;;  %v60_v13 = vrot.slane %v44_v10, %v36_v7  ;;  %v46_v14 = vcombine.high %v44_v10, %v44_v10  ;;  %699 = vmatprep.subr.bf16.mxu1 %v670_v52 }
   0xa   :  { %671 = vmatprep.subr.bf16.mxu0 %v670_v52 }
   0xb   :  { %v82_v16 = vrot.slane %v53_v11, %v81_v9  ;;  %v75_v17 = vcombine.high %v53_v11, %v53_v11  ;;  %v67_v18 = vrot.slane %v45_v12, %v36_v7  ;;  %v98_v19 = vrot.slane %v60_v13, %v81_v9  ;;  %v424_v12 = vld [vmem:[%s991_s4 + $0x20] sm:$0xff] }
   0xc   :  { %v74_v20 = vrot.slane %v46_v14, %v36_v7  ;;  %v76_v21 = vcombine.high %v60_v13, %v60_v13  ;;  %707 = vmatpush3.bf16.msra.mxu1 %v670_v52  ;;  %673 = vmatpush3.bf16.msra.mxu0 %v670_v52  ;;  %v425_v13 = vld [vmem:[%s991_s4 + $0x28] sm:$0xff] }
   0xd   :  { %v119_v22 = vsub.f32 %v82_v16, %v28_v15  ;;  %v86_v23 = vrot.slane %v67_v18, %v81_v9  ;;  %v77_v24 = vcombine.high %v67_v18, %v67_v18  ;;  %v123_v25 = vsub.f32 %v98_v19, %v28_v15 }
   0xe   :  { %v102_v26 = vrot.slane %v74_v20, %v81_v9  ;;  %v90_v27 = vrot.slane %v75_v17, %v81_v9  ;;  %v106_v30 = vrot.slane %v76_v21, %v81_v9  ;;  %v78_v31 = vcombine.high %v74_v20, %v74_v20 }
   0xf   :  { %v127_v28 = vmul.f32 %v119_v22, %v119_v22  ;;  %v120_v29 = vsub.f32 %v86_v23, %v28_v15  ;;  %v131_v34 = vmul.f32 %v123_v25, %v123_v25  ;;  %v94_v36 = vrot.slane %v77_v24, %v81_v9  ;;  %v426_v24 = vld [vmem:[%s991_s4 + $0x30] sm:$0xff]  ;;  %v427_v25 = vld [vmem:[%s991_s4 + $0x38] sm:$0xff] }
  0x10   :  { %v124_v32 = vsub.f32 %v102_v26, %v28_v15  ;;  %v121_v35 = vsub.f32 %v90_v27, %v28_v15  ;;  %v125_v38 = vsub.f32 %v106_v30, %v28_v15  ;;  %v110_v39 = vrot.slane %v78_v31, %v81_v9 }
  0x11   :  { %143 = vrot.lane.b32.xlu0 %v127_v28, %s806_s0  ;;  %v128_v33 = vmul.f32 %v120_v29, %v120_v29  ;;  %v122_v42 = vsub.f32 %v94_v36, %v28_v15  ;;  %v674_v16 = vpack.c.bf16 %v425_v13, %v424_v12  ;;  %v678_v29 = vpack.c.bf16 %v427_v25, %v426_v24 }
  0x12   :  { %v132_v37 = vmul.f32 %v124_v32, %v124_v32  ;;  %v129_v41 = vmul.f32 %v121_v35, %v121_v35  ;;  %v133_v43 = vmul.f32 %v125_v38, %v125_v38  ;;  %v126_v44 = vsub.f32 %v110_v39, %v28_v15  ;;  %v428_v38 = vld [vmem:[%s991_s4 + $0x40] sm:$0xff]  ;;  %v429_v39 = vld [vmem:[%s991_s4 + $0x48] sm:$0xff] }
  0x13   :  { %145 = vrot.lane.b32.xlu1 %v128_v33, %s806_s0  ;;  %v130_v45 = vmul.f32 %v122_v42, %v122_v42  ;;  %700 = vmatprep.subr.bf16.mxu1 %v674_v16  ;;  %v682_v42 = vpack.c.bf16 %v429_v39, %v428_v38 }
  0x14   :  { %v134_v46 = vmul.f32 %v126_v44, %v126_v44  ;;  %675 = vmatprep.subr.bf16.mxu0 %v674_v16  ;;  %708 = vmatpush3.bf16.msra.mxu1 %v674_v16 }
  0x15   :  { %151 = vrot.lane.b32.xlu0 %v131_v34, %s806_s0  ;;  %677 = vmatpush3.bf16.msra.mxu0 %v674_v16 }
  0x16   :  { %701 = vmatprep.subr.bf16.mxu1 %v678_v29  ;;  %679 = vmatprep.subr.bf16.mxu0 %v678_v29 }
  0x17   :  { %153 = vrot.lane.b32.xlu1 %v132_v37, %s806_s0 }
  0x18   :  { %709 = vmatpush3.bf16.msra.mxu1 %v678_v29 }
  0x19   :  { %147 = vrot.lane.b32.xlu0 %v129_v41, %s806_s0  ;;  %681 = vmatpush3.bf16.msra.mxu0 %v678_v29 }
  0x1a   :  { %702 = vmatprep.subr.bf16.mxu1 %v682_v42  ;;  %683 = vmatprep.subr.bf16.mxu0 %v682_v42 }
  0x1b   :  { %155 = vrot.lane.b32.xlu1 %v133_v43, %s806_s0 }
  0x1c   :  { %710 = vmatpush3.bf16.msra.mxu1 %v682_v42 }
  0x1d   :  { %149 = vrot.lane.b32.xlu0 %v130_v45, %s806_s0  ;;  %685 = vmatpush3.bf16.msra.mxu0 %v682_v42 }
  0x1f   :  { %157 = vrot.lane.b32.xlu1 %v134_v46, %s806_s0 }
  0x83   :  { %v144_v53 = vpop.permute.xlu0 %143 }
  0x84   :  { %v167_v54 = vadd.f32 %v144_v53, %v127_v28  ;;  %v686_v53 = vpack.c.bf16 %v431_v50, %v430_v49 }
  0x85   :  { %v146_v55 = vpop.permute.xlu1 %145 }
  0x86   :  { %725 = vrsqrt.f32 %v167_v54  ;;  %v870_v56 = vadd.f32 %v146_v55, %v128_v33  ;;  %vm177_vm0 = vcmp.eq.f32.partialorder %v167_v54, inf  ;;  %v180_v8 = vand.u32 2147483648, %v167_v54  ;;  %703 = vmatprep.subr.bf16.mxu1 %v686_v53  ;;  %687 = vmatprep.subr.bf16.mxu0 %v686_v53 }
  0x87   :  { %v152_v57 = vpop.permute.xlu0 %151  ;;  %vm179_vm1 = vcmp.eq.f32.partialorder %v167_v54, 0.0  ;;  %711 = vmatpush3.bf16.msra.mxu1 %v686_v53  ;;  %689 = vmatpush3.bf16.msra.mxu0 %v686_v53 }
  0x88   :  { %727 = vrsqrt.f32 %v870_v56  ;;  %v171_v58 = vadd.f32 %v152_v57, %v131_v34  ;;  %vm184_vm4 = vcmp.eq.f32.partialorder %v870_v56, inf  ;;  %v187_v32 = vand.u32 2147483648, %v870_v56  ;;  %v432_v57 = vld [vmem:[%s991_s4 + $0x60] sm:$0xff] }
  0x89   :  { %v154_v59 = vpop.permute.xlu1 %153  ;;  %vm186_vm7 = vcmp.eq.f32.partialorder %v870_v56, 0.0 }
  0x8a   :  { %729 = vrsqrt.f32 %v171_v58  ;;  %v172_v60 = vadd.f32 %v154_v59, %v132_v37  ;;  %vm205_vm2 = vcmp.eq.f32.partialorder %v171_v58, inf  ;;  %v208_v18 = vand.u32 2147483648, %v171_v58 }
  0x8b   :  { %v148_v61 = vpop.permute.xlu0 %147  ;;  %vm207_vm3 = vcmp.eq.f32.partialorder %v171_v58, 0.0 }
  0x8c   :  { %731 = vrsqrt.f32 %v172_v60  ;;  %v873_v62 = vadd.f32 %v148_v61, %v129_v41  ;;  %vm212_vm5 = vcmp.eq.f32.partialorder %v172_v60, inf  ;;  %vm214_vm6 = vcmp.eq.f32.partialorder %v172_v60, 0.0  ;;  %v435_v61 = vld [vmem:[%s991_s4 + $0x78] sm:$0xff] }
  0x8d   :  { %v156_v63 = vpop.permute.xlu1 %155  ;;  %v215_v23 = vand.u32 2147483648, %v172_v60 }
  0x8e   :  { %733 = vrsqrt.f32 %v873_v62  ;;  %v876_v0 = vadd.f32 %v156_v63, %v133_v43  ;;  %vm191_vm8 = vcmp.eq.f32.partialorder %v873_v62, inf  ;;  %vm193_vm11 = vcmp.eq.f32.partialorder %v873_v62, 0.0  ;;  %v595_v63 = vld [vmem:[%s989_s2] ss:$0 sm:$0xff]  ;;  %s808_s2 = smov [#allocation4]  }
  0x8f   :  { %v150_v1 = vpop.permute.xlu0 %149 }
  0x90   :  { %v726_v2 = vpop.eup %725  ;;  %735 = vrsqrt.f32 %v876_v0  ;;  %v879_v3 = vadd.f32 %v150_v1, %v130_v45  ;;  %vm219_vm9 = vcmp.eq.f32.partialorder %v876_v0, inf  ;;  %v222_v36 = vand.u32 2147483648, %v876_v0 }
  0x91   :  { %v158_v4 = vpop.permute.xlu1 %157  ;;  %v176_v5 = vmul.f32 %v726_v2, %v167_v54  ;;  %vm221_vm10 = vcmp.eq.f32.partialorder %v876_v0, 0.0  ;;  %v194_v45 = vand.u32 2147483648, %v873_v62  ;;  %v596_v2 = vld [vmem:[%s990_s3] ss:$0 sm:$0xff]  ;;  %s583_s3 = sshll.u32 %s808_s2, 4  ;;  %s584_s3 = int_to_ptr.vmem [resolvable:$true] %s583_s3 }
  0x92   :  { %v728_v6 = vpop.eup %727  ;;  %737 = vrsqrt.f32 %v879_v3  ;;  %v882_v7 = vadd.f32 %v158_v4, %v134_v46  ;;  %vm198_vm13 = vcmp.eq.f32.partialorder %v879_v3, inf  ;;  %v201_v55 = vand.u32 2147483648, %v879_v3  ;;  %p762_p1 = scmp.lt.s32.totalorder %s584_s3, %s584_s3 }
  0x93   :  { %v178_v9 = vsel %vm177_vm0, %v167_v54, %v176_v5  ;;  %v183_v15 = vmul.f32 %v728_v6, %v870_v56  ;;  %vm200_vm15 = vcmp.eq.f32.partialorder %v879_v3, 0.0  ;;  %vm403_vm0 = vcmask 1041409  }
  0x94   :  { %v730_v10 = vpop.eup %729  ;;  %739 = vrsqrt.f32 %v882_v7  ;;  %v181_v11 = vsel %vm179_vm1, %v180_v8, %v178_v9  ;;  %vm226_vm12 = vcmp.eq.f32.partialorder %v882_v7, inf  ;;  %v229_v48 = vand.u32 2147483648, %v882_v7 }
  0x95   :  { %235 = vperm.xlu0 %722, %v181_v11   ;;  %v204_v14 = vmul.f32 %v730_v10, %v171_v58  ;;  %v185_v27 = vsel %vm184_vm4, %v870_v56, %v183_v15  ;;  %vm228_vm14 = vcmp.eq.f32.partialorder %v882_v7, 0.0  ;;  %vm405_vm1 = vcmask 1042434  }
  0x96   :  { %v732_v17 = vpop.eup %731  ;;  %v188_v35 = vsel %vm186_vm7, %v187_v32, %v185_v27  ;;  %vm411_vm4 = vcmask 1045509  }
  0x97   :  { %v206_v19 = vsel %vm205_vm2, %v171_v58, %v204_v14  ;;  %v211_v20 = vmul.f32 %v732_v17, %v172_v60  ;;  %v433_v58 = vld [vmem:[%s991_s4 + $0x68] sm:$0xff]  ;;  %vm407_vm2 = vcmask 1043459  }
  0x98   :  { %v734_v21 = vpop.eup %733  ;;  %v209_v22 = vsel %vm207_vm3, %v208_v18, %v206_v19  ;;  %v690_v59 = vpack.c.bf16 %v433_v58, %v432_v57  ;;  %vm409_vm3 = vcmask 1044484  }
  0x99   :  { %255 = vperm.xlu1 %723, %v209_v22   ;;  %v213_v26 = vsel %vm212_vm5, %v172_v60, %v211_v20  ;;  %v190_v28 = vmul.f32 %v734_v21, %v873_v62  ;;  %v434_v60 = vld [vmem:[%s991_s4 + $0x70] sm:$0xff]  ;;  %vm413_vm5 = vcmask 1046534   ;;  %s757_s4 = scalar_lea.vmem %s584_s3, 128 }
  0x9a   :  { %v736_v30 = vpop.eup %735  ;;  %v216_v31 = vsel %vm214_vm6, %v215_v23, %v213_v26  ;;  %704 = vmatprep.subr.bf16.mxu1 %v690_v59  ;;  %691 = vmatprep.subr.bf16.mxu0 %v690_v59  ;;  %vm415_vm6 = vcmask 1047559   ;;  %p758_p0 = scmp.ne.s32.totalorder %s584_s3, %s757_s4  ;;  %p763_p2 = scmp.lt.s32.totalorder %s757_s4, %s757_s4 }
  0x9b   :  { %260 = vperm.xlu0 %722, %v216_v31   ;;  %v218_v33 = vmul.f32 %v736_v30, %v876_v0  ;;  %v192_v37 = vsel %vm191_vm8, %v873_v62, %v190_v28  ;;  %712 = vmatpush3.bf16.msra.mxu1 %v690_v59  ;;  %v694_v62 = vpack.c.bf16 %v435_v61, %v434_v60 }
  0x9c   :  { %v738_v34 = vpop.eup %737  ;;  %v195_v47 = vsel %vm193_vm11, %v194_v45, %v192_v37  ;;  %693 = vmatpush3.bf16.msra.mxu0 %v690_v59  ;;  %p764_p3 = por %p763_p2, %p762_p1 }
  0x9d   :  { %240 = vperm.xlu1 %723, %v188_v35   ;;  %v220_v40 = vsel %vm219_vm9, %v876_v0, %v218_v33  ;;  %v197_v41 = vmul.f32 %v738_v34, %v879_v3  ;;  %705 = vmatprep.subr.bf16.mxu1 %v694_v62 }
  0x9e   :  { %v740_v43 = vpop.eup %739  ;;  %v223_v44 = vsel %vm221_vm10, %v222_v36, %v220_v40  ;;  %695 = vmatprep.subr.bf16.mxu0 %v694_v62  ;;  %p765_p4 = pnand %p764_p3, %p758_p0 }
  0x9f   :  { %265 = vperm.xlu0 %722, %v223_v44   ;;  %v225_v46 = vmul.f32 %v740_v43, %v882_v7  ;;  %v199_v52 = vsel %vm198_vm13, %v879_v3, %v197_v41  ;;  %713 = vmatpush3.bf16.msra.mxu1 %v694_v62 }
  0xa0   :  { %v202_v56 = vsel %vm200_vm15, %v201_v55, %v199_v52  ;;  %697 = vmatpush3.bf16.msra.mxu0 %v694_v62 }
  0xa1   :  { %245 = vperm.xlu1 %723, %v195_v47   ;;  %v227_v51 = vsel %vm226_vm12, %v882_v7, %v225_v46 }
  0xa2   :  { %v230_v54 = vsel %vm228_vm14, %v229_v48, %v227_v51 }
  0xa3   :  { %270 = vperm.xlu0 %722, %v230_v54  }
  0xa5   :  { %250 = vperm.xlu1 %723, %v202_v56  }
 0x114   :  { %v236_v0 = vpop.permute.xlu0 %235 }
 0x115   :  { %v279_v1 = vsub.f32 %v236_v0, %v595_v63 }
 0x117   :  { %v287_v3 = vmul.f32 %v279_v1, %v279_v1 }
 0x118   :  { %v256_v4 = vpop.permute.xlu1 %255 }
 0x119   :  { %v301_v5 = vmul.f32 %v596_v2, %v287_v3  ;;  %v283_v6 = vsub.f32 %v256_v4, %v595_v63 }
 0x11a   :  { %v261_v7 = vpop.permute.xlu0 %260 }
 0x11b   :  { %v309_v8 = vmul.f32 1.442695, %v301_v5  ;;  %v291_v9 = vmul.f32 %v283_v6, %v283_v6  ;;  %v284_v10 = vsub.f32 %v261_v7, %v595_v63 }
 0x11c   :  { %v241_v11 = vpop.permute.xlu1 %240 }
 0x11d   :  { %741 = vpow2.f32 %v309_v8  ;;  %v305_v12 = vmul.f32 %v596_v2, %v291_v9  ;;  %v292_v13 = vmul.f32 %v284_v10, %v284_v10  ;;  %v280_v14 = vsub.f32 %v241_v11, %v595_v63 }
 0x11e   :  { %v266_v15 = vpop.permute.xlu0 %265 }
 0x11f   :  { %v317_v16 = vmul.f32 1.442695, %v305_v12  ;;  %v306_v17 = vmul.f32 %v596_v2, %v292_v13  ;;  %v288_v18 = vmul.f32 %v280_v14, %v280_v14  ;;  %v285_v19 = vsub.f32 %v266_v15, %v595_v63 }
 0x120   :  { %v246_v20 = vpop.permute.xlu1 %245 }
 0x121   :  { %743 = vpow2.f32 %v317_v16  ;;  %v319_v21 = vmul.f32 1.442695, %v306_v17  ;;  %v302_v22 = vmul.f32 %v596_v2, %v288_v18  ;;  %v293_v23 = vmul.f32 %v285_v19, %v285_v19 }
 0x122   :  { %v281_v24 = vsub.f32 %v246_v20, %v595_v63  ;;  %v271_v25 = vpop.permute.xlu0 %270 }
 0x123   :  { %745 = vpow2.f32 %v319_v21  ;;  %v311_v26 = vmul.f32 1.442695, %v302_v22  ;;  %v307_v27 = vmul.f32 %v596_v2, %v293_v23  ;;  %v286_v28 = vsub.f32 %v271_v25, %v595_v63 }
 0x124   :  { %v289_v29 = vmul.f32 %v281_v24, %v281_v24  ;;  %v251_v30 = vpop.permute.xlu1 %250 }
 0x125   :  { %747 = vpow2.f32 %v311_v26  ;;  %v321_v31 = vmul.f32 1.442695, %v307_v27  ;;  %v294_v32 = vmul.f32 %v286_v28, %v286_v28  ;;  %v282_v33 = vsub.f32 %v251_v30, %v595_v63 }
 0x126   :  { %v303_v34 = vmul.f32 %v596_v2, %v289_v29 }
 0x127   :  { %v742_v35 = vpop.eup %741  ;;  %749 = vpow2.f32 %v321_v31  ;;  %v308_v36 = vmul.f32 %v596_v2, %v294_v32  ;;  %v290_v37 = vmul.f32 %v282_v33, %v282_v33 }
 0x128   :  { %v313_v38 = vmul.f32 1.442695, %v303_v34  ;;  %654 = vmatprep.mubr.f32.mxu0 %v742_v35  ;;  %v347_v43 = vrot.slane %v742_v35, 4 }
 0x129   :  { %v323_v39 = vmul.f32 1.442695, %v308_v36  ;;  %v304_v40 = vmul.f32 %v596_v2, %v290_v37 }
 0x12a   :  { %751 = vpow2.f32 %v313_v38  ;;  %v348_v48 = vadd.f32 %v742_v35, %v347_v43 }
 0x12b   :  { %v744_v41 = vpop.eup %743  ;;  %753 = vpow2.f32 %v323_v39  ;;  %v315_v42 = vmul.f32 1.442695, %v304_v40 }
 0x12c   :  { %660 = vmatprep.mubr.f32.mxu1 %v744_v41  ;;  %v371_v46 = vrot.slane %v744_v41, 4  ;;  %v349_v55 = vrot.slane %v348_v48, 2 }
 0x12d   :  { %v746_v44 = vpop.eup %745  ;;  %755 = vpow2.f32 %v315_v42 }
 0x12e   :  { %661 = vmatmul.mubr.f32.vlgmr.msra.gmra.mrb[0].mxu1 %v746_v44  ;;  %v377_v49 = vrot.slane %v746_v44, 4  ;;  %v372_v52 = vadd.f32 %v744_v41, %v371_v46  ;;  %v350_v2 = vadd.f32 %v349_v55, %v348_v48 }
 0x12f   :  { %v748_v45 = vpop.eup %747 }
 0x130   :  { %v353_v47 = vrot.slane %v748_v45, 4  ;;  %655 = vmatmul.mubr.f32.vlgmr.msra.gmra.mrb[0].mxu0 %v748_v45  ;;  %v378_v57 = vadd.f32 %v746_v44, %v377_v49  ;;  %v373_v1 = vrot.slane %v372_v52, 2  ;;  %v351_v13 = vrot.slane %v350_v2, 1 }
 0x131   :  { %v750_v50 = vpop.eup %749 }
 0x132   :  { %663 = vmatprep.mubr.f32.mxu1 %v750_v50  ;;  %v354_v51 = vadd.f32 %v748_v45, %v353_v47  ;;  %v383_v53 = vrot.slane %v750_v50, 4  ;;  %v379_v4 = vrot.slane %v378_v57, 2  ;;  %v374_v12 = vadd.f32 %v373_v1, %v372_v52 }
 0x133   :  { %v352_v23 = vadd.f32 %v351_v13, %v350_v2 }
 0x134   :  { %v752_v54 = vpop.eup %751  ;;  %v355_v56 = vrot.slane %v354_v51, 2  ;;  %v384_v60 = vadd.f32 %v750_v50, %v383_v53  ;;  %v380_v15 = vadd.f32 %v379_v4, %v378_v57  ;;  %v375_v22 = vrot.slane %v374_v12, 1 }
 0x135   :  { %v754_v58 = vpop.eup %753  ;;  %657 = vmatprep.mubr.f32.mxu0 %v752_v54  ;;  %v359_v59 = vrot.slane %v752_v54, 4 }
 0x136   :  { %664 = vmatmul.mubr.f32.gmra.mrb[2].mxu1 %v754_v58  ;;  %v356_v61 = vadd.f32 %v355_v56, %v354_v51  ;;  %v389_v62 = vrot.slane %v754_v58, 4  ;;  %v385_v7 = vrot.slane %v384_v60, 2  ;;  %v381_v25 = vrot.slane %v380_v15, 1 }
 0x137   :  { %v756_v63 = vpop.eup %755  ;;  %v360_v0 = vadd.f32 %v752_v54, %v359_v59  ;;  %v376_v30 = vadd.f32 %v375_v22, %v374_v12 }
 0x138   :  { %658 = vmatmul.mubr.f32.gmra.mrb[2].mxu0 %v756_v63  ;;  %v365_v3 = vrot.slane %v756_v63, 4  ;;  %v390_v5 = vadd.f32 %v754_v58, %v389_v62  ;;  %v357_v8 = vrot.slane %v356_v61, 1  ;;  %v386_v17 = vadd.f32 %v385_v7, %v384_v60 }
 0x139   :  { %v361_v6 = vrot.slane %v360_v0, 2  ;;  %v382_v32 = vadd.f32 %v381_v25, %v380_v15 }
 0x13a   :  { %v366_v9 = vadd.f32 %v756_v63, %v365_v3  ;;  %v391_v10 = vrot.slane %v390_v5, 2  ;;  %v358_v18 = vadd.f32 %v357_v8, %v356_v61  ;;  %v387_v26 = vrot.slane %v386_v17, 1 }
 0x13b   :  { %v362_v11 = vadd.f32 %v361_v6, %v360_v0 }
 0x13c   :  { %v367_v14 = vrot.slane %v366_v9, 2  ;;  %v392_v20 = vadd.f32 %v391_v10, %v390_v5  ;;  %v404_v29 = vsel %vm403_vm0, %v358_v18, %v352_v23  ;;  %v388_v34 = vadd.f32 %v387_v26, %v386_v17 }
 0x13d   :  { %v363_v16 = vrot.slane %v362_v11, 1 }
 0x13e   :  { %v368_v19 = vadd.f32 %v367_v14, %v366_v9  ;;  %v393_v28 = vrot.slane %v392_v20, 1 }
 0x13f   :  { %v364_v21 = vadd.f32 %v363_v16, %v362_v11 }
 0x140   :  { %v369_v24 = vrot.slane %v368_v19, 1  ;;  %v394_v36 = vadd.f32 %v393_v28, %v392_v20 }
 0x141   :  { %v406_v31 = vsel %vm405_vm1, %v364_v21, %v404_v29 }
 0x142   :  { %v370_v27 = vadd.f32 %v369_v24, %v368_v19 }
 0x144   :  { %v408_v33 = vsel %vm407_vm2, %v370_v27, %v406_v31 }
 0x145   :  { %v410_v35 = vsel %vm409_vm3, %v376_v30, %v408_v33 }
 0x146   :  { %v412_v37 = vsel %vm411_vm4, %v382_v32, %v410_v35 }
 0x147   :  { %v414_v38 = vsel %vm413_vm5, %v388_v34, %v412_v37 }
 0x148   :  { %v416_v39 = vsel %vm415_vm6, %v394_v36, %v414_v38 }
 0x149   :  { %419 = vst [vmem:[#allocation4] sm:$0xff] %v416_v39 }
 0x14a   :  { %768 = shalt.err (!%p765_p4)
}
 0x14b   :  { %s769_s17 = scalar_lea.hbm %s994_s7, 128 }
 0x14c   :  { %p770_p5 = scmp.ne.s32.totalorder %s994_s7, %s769_s17  ;;  %p773_p6 = scmp.lt.u32.totalorder %s769_s17, %s994_s7 }
 0x14e   :  { %p775_p7 = pnand %p773_p6, %p770_p5 }
 0x150   :  { %778 = shalt.err (!%p775_p7)
}
 0x151   :  { %586 = dma.vmem_to_hbm [thread:$0]  %s584_s3, 128, %s994_s7, [#allocation5]   ;;  %v597_v40 = vld [vmem:[%s992_s5] ss:$0 sm:$0xff]  ;;  %vm556_vm7 = vcmask 64512  }
 0x152   :  { %s809_s5 = smov [#allocation2]  }
 0x153   :  { %s570_s7 = sshll.u32 %s809_s5, 4  ;;  %s571_s7 = int_to_ptr.vmem [resolvable:$true] %s570_s7 }
 0x154   :  { %s779_s26 = scalar_lea.vmem %s571_s7, 1024  ;;  %p784_p9 = scmp.lt.s32.totalorder %s571_s7, %s571_s7 }
 0x155   :  { %p780_p8 = scmp.ne.s32.totalorder %s571_s7, %s779_s26  ;;  %p785_p10 = scmp.lt.s32.totalorder %s779_s26, %s779_s26 }
 0x157   :  { %p786_p11 = por %p785_p10, %p784_p9 }
 0x159   :  { %p787_p12 = pnand %p786_p11, %p780_p8 }
 0x201   :  { %v662_v41 = vpop.f32.mrb[0].mxu1 }
 0x202   :  { %v535_v42 = vadd.f32 %v662_v41, %v597_v40  ;;  %v529_v43 = vpop.f32.mrb[1].mxu1 }
 0x203   :  { %v530_v44 = vadd.f32 %v597_v40, %v529_v43  ;;  %v656_v45 = vpop.f32.mrb[0].mxu0 }
 0x204   :  { %v553_v46 = vmax.f32 %v535_v42, 0.0  ;;  %v515_v47 = vadd.f32 %v656_v45, %v597_v40  ;;  %v509_v48 = vpop.f32.mrb[1].mxu0 }
 0x205   :  { %v552_v49 = vmax.f32 %v530_v44, 0.0  ;;  %v510_v50 = vadd.f32 %v597_v40, %v509_v48 }
 0x206   :  { %562 = vst.msk [vmem:[#allocation2 + $0x28] sm:$0xff] %vm556_vm7, %v553_v46  ;;  %v549_v51 = vmax.f32 %v515_v47, 0.0 }
 0x207   :  { %561 = vst.msk [vmem:[#allocation2 + $0x20] sm:$0xff] %vm556_vm7, %v552_v49  ;;  %v548_v52 = vmax.f32 %v510_v50, 0.0 }
 0x208   :  { %558 = vst.msk [vmem:[#allocation2 + $0x8] sm:$0xff] %vm556_vm7, %v549_v51 }
 0x209   :  { %557 = vst.msk [vmem:[#allocation2] sm:$0xff] %vm556_vm7, %v548_v52  ;;  %v665_v53 = vpop.f32.mrb[2].mxu1 }
 0x20a   :  { %v545_v54 = vadd.f32 %v665_v53, %v597_v40  ;;  %v539_v55 = vpop.f32.mrb[3].mxu1 }
 0x20b   :  { %v540_v56 = vadd.f32 %v597_v40, %v539_v55  ;;  %v659_v57 = vpop.f32.mrb[2].mxu0 }
 0x20c   :  { %v555_v58 = vmax.f32 %v545_v54, 0.0  ;;  %v525_v59 = vadd.f32 %v659_v57, %v597_v40  ;;  %v519_v60 = vpop.f32.mrb[3].mxu0 }
 0x20d   :  { %v554_v61 = vmax.f32 %v540_v56, 0.0  ;;  %v520_v62 = vadd.f32 %v597_v40, %v519_v60 }
 0x20e   :  { %564 = vst.msk [vmem:[#allocation2 + $0x38] sm:$0xff] %vm556_vm7, %v555_v58  ;;  %v551_v63 = vmax.f32 %v525_v59, 0.0 }
 0x20f   :  { %563 = vst.msk [vmem:[#allocation2 + $0x30] sm:$0xff] %vm556_vm7, %v554_v61  ;;  %v550_v0 = vmax.f32 %v520_v62, 0.0 }
 0x210   :  { %560 = vst.msk [vmem:[#allocation2 + $0x18] sm:$0xff] %vm556_vm7, %v551_v63 }
 0x211   :  { %559 = vst.msk [vmem:[#allocation2 + $0x10] sm:$0xff] %vm556_vm7, %v550_v0 }
 0x212   :  { %790 = shalt.err (!%p787_p12)
}
 0x213   :  { %s791_s1 = scalar_lea.hbm %s993_s6, 1024 }
 0x214   :  { %p792_p13 = scmp.ne.s32.totalorder %s993_s6, %s791_s1  ;;  %p795_p0 = scmp.lt.u32.totalorder %s791_s1, %s993_s6 }
 0x216   :  { %p797_p1 = pnand %p795_p0, %p792_p13 }
 0x218   :  { %800 = shalt.err (!%p797_p1)
}
 0x219   :  { %s810_s9 = smov 128   ;;  %s811_s10 = smov 8  }
 0x21a   :  { %576 = dma.vmem_to_hbm [thread:$0]  %s571_s7, 1024, %s993_s6, [#allocation3], %s810_s9, %s810_s9, %s811_s10  }
 0x21b   :  { %801 = dma.done.wait [#allocation3], 1024  }
 0x21c   :  { %802 = vsyncadd [#allocation3], 4294966272 }
 0x21d   :  { %803 = dma.done.wait [#allocation5], 128  }
 0x21e   :  { %804 = vsyncadd [#allocation5], 4294967168 }
 0x21f   :  { %593 = vsyncpa [#allocation3], 1 }
 0x220   :  { %594 = vsyncpa [#allocation5], 1 }

</bundles_post_ra>
